<compile_context>
chip_gen: v7x
topology: tpu7x:2x2x1
jax: 0.10.0
libtpu: 0.0.40
codegen_flags: <defaults>
</compile_context>

<pallas_src>
import jax
import jax.numpy as jnp
from jax.experimental import pallas as pl
from jax.experimental.pallas import tpu as pltpu


def _round_up(x, m):
    return (x + m - 1) // m * m


def _attention_gru_kernel(
    h_ref, x_ref, encproj_ref, enc_ref,
    wd_t_ref, wo_ref,
    wic_t_ref, wie_t_ref, whh_t_ref, bi_ref, bh_ref,
    wv_t_ref, bv_ref,
    hidden_out_ref, logits_out_ref,
):
    f32 = jnp.float32
    H = h_ref.shape[-1]

    h = h_ref[...].astype(f32)          # (TB, H)
    x = x_ref[...].astype(f32)          # (TB, E)

    def dot(a, b):
        return jnp.dot(a, b, preferred_element_type=f32)

    # --- additive attention: mlp_out(tanh(Wd h + We enc)) -------------------
    # enc_proj (hoisted) already contains  enc @ W_enc.T + b_enc + b_dec.
    dec_proj = dot(h, wd_t_ref[...])                          # (TB, M_pad)
    t = jnp.tanh(encproj_ref[...] + dec_proj[:, None, :])     # (TB, S, M_pad)
    # scores: lane-axis reduction against the (1, M_pad) mlp_out row.
    e = jnp.sum(t * wo_ref[...][None, :, :], axis=-1)         # (TB, S)

    # softmax over the sequence axis (lane axis of the score tile).
    m = jnp.max(e, axis=-1, keepdims=True)                    # (TB, 1)
    p = jnp.exp(e - m)                                        # (TB, S)
    denom = jnp.sum(p, axis=-1, keepdims=True)                # (TB, 1)
    attn = p * pl.reciprocal(denom, approx=True)              # (TB, S)

    # context c_t = sum_s attn[b, s] * enc[s, b, :]  (enc kept seq-major).
    attn_t = attn.T                                           # (S, TB)
    c = jnp.sum(attn_t[:, :, None] * enc_ref[...].astype(f32), axis=0)  # (TB, H)

    # --- GRUCell on inputs = [c_t ; word_emb], fused 3H-wide gates ----------
    gi = dot(c, wic_t_ref[...]) + dot(x, wie_t_ref[...]) + bi_ref[...]  # (TB, 3H)
    gh = dot(h, whh_t_ref[...]) + bh_ref[...]                           # (TB, 3H)

    i_r, i_z, i_n = gi[:, :H], gi[:, H:2 * H], gi[:, 2 * H:]
    h_r, h_z, h_n = gh[:, :H], gh[:, H:2 * H], gh[:, 2 * H:]

    r = jax.nn.sigmoid(i_r + h_r)
    z = jax.nn.sigmoid(i_z + h_z)
    n = jnp.tanh(i_n + r * h_n)
    h_new = (1.0 - z) * n + z * h                             # (TB, H)

    # --- decoder2vocab (lane-dense V_pad output) ----------------------------
    logits = dot(h_new, wv_t_ref[...]) + bv_ref[...]          # (TB, V_pad)

    hidden_out_ref[...] = h_new.astype(hidden_out_ref.dtype)
    logits_out_ref[...] = logits.astype(logits_out_ref.dtype)


def attention_gru_cell(hidden_prev, word_emb, encoder_states, params, *, block_b=128):
    f32 = jnp.float32
    B, H = hidden_prev.shape
    E = word_emb.shape[-1]
    S = encoder_states.shape[0]
    M = params["W_dec"].shape[0]
    V = params["W_vocab"].shape[0]

    M_pad = _round_up(M, 128)
    V_pad = _round_up(V, 128)
    TB = min(block_b, _round_up(B, 8))
    B_pad = _round_up(B, TB)
    n_blocks = B_pad // TB

    # Batch-pad the per-step tensors (padded rows are sliced off afterwards).
    h2 = jnp.zeros((B_pad, H), f32).at[:B].set(hidden_prev.astype(f32))
    x2 = jnp.zeros((B_pad, E), f32).at[:B].set(word_emb.astype(f32))
    enc = jnp.zeros((S, B_pad, H), f32).at[:, :B].set(encoder_states.astype(f32))

    # Hoisted, h-independent encoder projection with both attention biases
    # folded in (mlp_out's scalar bias cancels inside the softmax).
    enc_proj = (jnp.einsum("sbh,mh->bsm", enc, params["W_enc"].astype(f32))
                + (params["b_enc"] + params["b_dec"]).astype(f32))     # (B_pad, S, M)
    enc_proj = jnp.pad(enc_proj, ((0, 0), (0, 0), (0, M_pad - M)))     # (B_pad, S, M_pad)

    pad_cols = lambda a, n: jnp.pad(a, ((0, 0), (0, n - a.shape[1])))

    W_ih = params["W_ih"].astype(f32)            # (3H, H+E)
    W_hh = params["W_hh"].astype(f32)            # (3H, H)
    weights = [
        pad_cols(params["W_dec"].T.astype(f32), M_pad),                # wd_t  (H, M_pad)
        pad_cols(params["W_out"].astype(f32), M_pad),                  # wo    (1, M_pad)
        W_ih[:, :H].T,                                                 # wic_t (H, 3H)
        W_ih[:, H:].T,                                                 # wie_t (E, 3H)
        W_hh.T,                                                        # whh_t (H, 3H)
        params["b_ih"].astype(f32).reshape(1, 3 * H),                  # bi    (1, 3H)
        params["b_hh"].astype(f32).reshape(1, 3 * H),                  # bh    (1, 3H)
        pad_cols(params["W_vocab"].T.astype(f32), V_pad),              # wv_t  (H, V_pad)
        pad_cols(params["b_vocab"].astype(f32).reshape(1, V), V_pad),  # bv    (1, V_pad)
    ]
    weight_specs = [pl.BlockSpec(w.shape, lambda b: (0, 0)) for w in weights]

    in_specs = [
        pl.BlockSpec((TB, H), lambda b: (b, 0)),            # hidden_prev
        pl.BlockSpec((TB, E), lambda b: (b, 0)),            # word_emb
        pl.BlockSpec((TB, S, M_pad), lambda b: (b, 0, 0)),  # hoisted enc_proj
        pl.BlockSpec((S, TB, H), lambda b: (0, b, 0)),      # encoder_states (seq-major)
    ] + weight_specs

    out_specs = [
        pl.BlockSpec((TB, H), lambda b: (b, 0)),
        pl.BlockSpec((TB, V_pad), lambda b: (b, 0)),
    ]
    out_shape = [
        jax.ShapeDtypeStruct((B_pad, H), f32),
        jax.ShapeDtypeStruct((B_pad, V_pad), f32),
    ]

    hidden, logits = pl.pallas_call(
        _attention_gru_kernel,
        grid=(n_blocks,),
        in_specs=in_specs,
        out_specs=out_specs,
        out_shape=out_shape,
        compiler_params=pltpu.CompilerParams(dimension_semantics=("parallel",)),
    )(h2, x2, enc_proj, enc, *weights)

    return hidden[:B], logits[:B, :V]


def reference(hidden_prev, word_emb, encoder_states, p):
    """Pure-JAX transcription of the PyTorch forward (for verification)."""
    H = hidden_prev.shape[-1]
    e = jnp.tanh(hidden_prev @ p["W_dec"].T + p["b_dec"]
                 + encoder_states @ p["W_enc"].T + p["b_enc"])
    e = e @ p["W_out"].T + p["b_out"]                    # (S, B, 1)
    attn = jax.nn.softmax(e, axis=0)
    c = jnp.sum(attn * encoder_states, axis=0)           # (B, H)
    inputs = jnp.concatenate([c, word_emb], axis=-1)
    gi = inputs @ p["W_ih"].T + p["b_ih"]
    gh = hidden_prev @ p["W_hh"].T + p["b_hh"]
    i_r, i_z, i_n = gi[:, :H], gi[:, H:2 * H], gi[:, 2 * H:]
    h_r, h_z, h_n = gh[:, :H], gh[:, H:2 * H], gh[:, 2 * H:]
    r = jax.nn.sigmoid(i_r + h_r)
    z = jax.nn.sigmoid(i_z + h_z)
    n = jnp.tanh(i_n + r * h_n)
    h_new = (1.0 - z) * n + z * hidden_prev
    logits = h_new @ p["W_vocab"].T + p["b_vocab"]
    return h_new, logits


def init_params(key, vocab_size, emb_dim, hid_dim, mlp_hid_dim):
    def lin(k, out_f, in_f):
        k1, k2 = jax.random.split(k)
        bound = 1.0 / jnp.sqrt(jnp.float32(in_f))
        W = jax.random.uniform(k1, (out_f, in_f), jnp.float32, -bound, bound)
        b = jax.random.uniform(k2, (out_f,), jnp.float32, -bound, bound)
        return W, b

    ks = jax.random.split(key, 6)
    W_dec, b_dec = lin(ks[0], mlp_hid_dim, hid_dim)
    W_enc, b_enc = lin(ks[1], mlp_hid_dim, hid_dim)
    W_out, b_out = lin(ks[2], 1, mlp_hid_dim)
    W_ih, b_ih = lin(ks[3], 3 * hid_dim, hid_dim + emb_dim)
    W_hh, b_hh = lin(ks[4], 3 * hid_dim, hid_dim)
    W_vocab, b_vocab = lin(ks[5], vocab_size, hid_dim)
    return dict(W_dec=W_dec, b_dec=b_dec, W_enc=W_enc, b_enc=b_enc,
                W_out=W_out, b_out=b_out, W_ih=W_ih, b_ih=b_ih,
                W_hh=W_hh, b_hh=b_hh, W_vocab=W_vocab, b_vocab=b_vocab)


if __name__ == "__main__":
    vocab_size, emb_dim, hid_dim, mlp_hid_dim = 64, 16, 32, 100
    B, S = 2, 8

    key = jax.random.PRNGKey(0)
    kp, kh, ke, ks = jax.random.split(key, 4)
    params = init_params(kp, vocab_size, emb_dim, hid_dim, mlp_hid_dim)
    hidden_prev = jax.random.normal(kh, (B, hid_dim), jnp.float32)
    word_emb = jax.random.normal(ke, (B, emb_dim), jnp.float32)
    encoder_states = jax.random.normal(ks, (S, B, hid_dim), jnp.float32)

    hidden, logits = attention_gru_cell(hidden_prev, word_emb, encoder_states, params)
    jax.block_until_ready((hidden, logits))

    ref_hidden, ref_logits = reference(hidden_prev, word_emb, encoder_states, params)
    assert hidden.shape == (B, hid_dim) and logits.shape == (B, vocab_size)
    # Slightly looser tolerance: softmax denominator uses the EUP approx reciprocal.
    assert jnp.allclose(hidden, ref_hidden, atol=5e-3, rtol=5e-3), "hidden mismatch"
    assert jnp.allclose(logits, ref_logits, atol=5e-3, rtol=5e-3), "logits mismatch"
    print("KERNEL_OK")
</pallas_src>

<mosaic_0001>
module attributes {stable_mosaic.version = 11 : i64} {
  func.func @_attention_gru_kernel(%arg0: i32, %arg1: memref<8x32xf32, #tpu.memory_space<vmem>>, %arg2: memref<8x16xf32, #tpu.memory_space<vmem>>, %arg3: memref<8x8x128xf32, #tpu.memory_space<vmem>>, %arg4: memref<8x8x32xf32, #tpu.memory_space<vmem>>, %arg5: memref<32x128xf32, #tpu.memory_space<vmem>>, %arg6: memref<1x128xf32, #tpu.memory_space<vmem>>, %arg7: memref<32x96xf32, #tpu.memory_space<vmem>>, %arg8: memref<16x96xf32, #tpu.memory_space<vmem>>, %arg9: memref<32x96xf32, #tpu.memory_space<vmem>>, %arg10: memref<1x96xf32, #tpu.memory_space<vmem>>, %arg11: memref<1x96xf32, #tpu.memory_space<vmem>>, %arg12: memref<32x128xf32, #tpu.memory_space<vmem>>, %arg13: memref<1x128xf32, #tpu.memory_space<vmem>>, %arg14: memref<8x32xf32, #tpu.memory_space<vmem>>, %arg15: memref<8x128xf32, #tpu.memory_space<vmem>>) attributes {dimension_semantics = [#tpu.dimension_semantics<parallel>], iteration_bounds = array<i64: 1>, scalar_prefetch = 0 : i64, scratch_operands = 0 : i64, tpu.core_type = #tpu.core_type<tc>, window_params = [{transform_indices = @transform_0, window_bounds = array<i64: 8, 32>}, {transform_indices = @transform_1, window_bounds = array<i64: 8, 16>}, {transform_indices = @transform_2, window_bounds = array<i64: 8, 8, 128>}, {transform_indices = @transform_3, window_bounds = array<i64: 8, 8, 32>}, {pipeline_mode = #tpu.pipeline_mode<synchronous>, transform_indices = @transform_4, window_bounds = array<i64: 32, 128>}, {pipeline_mode = #tpu.pipeline_mode<synchronous>, transform_indices = @transform_5, window_bounds = array<i64: 1, 128>}, {pipeline_mode = #tpu.pipeline_mode<synchronous>, transform_indices = @transform_6, window_bounds = array<i64: 32, 96>}, {pipeline_mode = #tpu.pipeline_mode<synchronous>, transform_indices = @transform_7, window_bounds = array<i64: 16, 96>}, {pipeline_mode = #tpu.pipeline_mode<synchronous>, transform_indices = @transform_8, window_bounds = array<i64: 32, 96>}, {pipeline_mode = #tpu.pipeline_mode<synchronous>, transform_indices = @transform_9, window_bounds = array<i64: 1, 96>}, {pipeline_mode = #tpu.pipeline_mode<synchronous>, transform_indices = @transform_10, window_bounds = array<i64: 1, 96>}, {pipeline_mode = #tpu.pipeline_mode<synchronous>, transform_indices = @transform_11, window_bounds = array<i64: 32, 128>}, {pipeline_mode = #tpu.pipeline_mode<synchronous>, transform_indices = @transform_12, window_bounds = array<i64: 1, 128>}, {transform_indices = @transform_13, window_bounds = array<i64: 8, 32>}, {transform_indices = @transform_14, window_bounds = array<i64: 8, 128>}]} {
    %c0 = arith.constant 0 : index
    %c0_0 = arith.constant 0 : index
    %0 = vector.load %arg1[%c0, %c0_0] : memref<8x32xf32, #tpu.memory_space<vmem>>, vector<8x32xf32>
    %c0_1 = arith.constant 0 : index
    %c0_2 = arith.constant 0 : index
    %1 = vector.load %arg2[%c0_1, %c0_2] : memref<8x16xf32, #tpu.memory_space<vmem>>, vector<8x16xf32>
    %c0_3 = arith.constant 0 : index
    %c0_4 = arith.constant 0 : index
    %2 = vector.load %arg5[%c0_3, %c0_4] : memref<32x128xf32, #tpu.memory_space<vmem>>, vector<32x128xf32>
    %cst = arith.constant dense<0.000000e+00> : vector<8x128xf32>
    %3 = tpu.matmul %0, %2, %cst {dimension_numbers = #tpu.dot_dimension_numbers<[1], [0], [0], [1], [0, 0, 1, 1], [], []>} : vector<8x32xf32>, vector<32x128xf32>, vector<8x128xf32> -> vector<8x128xf32>
    %c0_5 = arith.constant 0 : index
    %c0_6 = arith.constant 0 : index
    %c0_7 = arith.constant 0 : index
    %4 = vector.load %arg3[%c0_5, %c0_6, %c0_7] : memref<8x8x128xf32, #tpu.memory_space<vmem>>, vector<8x8x128xf32>
    %5 = vector.shape_cast %3 : vector<8x128xf32> to vector<8x1x128xf32>
    %6 = vector.broadcast %5 : vector<8x1x128xf32> to vector<8x8x128xf32>
    %7 = arith.addf %4, %6 : vector<8x8x128xf32>
    %8 = math.tanh %7 : vector<8x8x128xf32>
    %c0_8 = arith.constant 0 : index
    %c0_9 = arith.constant 0 : index
    %9 = vector.load %arg6[%c0_8, %c0_9] : memref<1x128xf32, #tpu.memory_space<vmem>>, vector<1x128xf32>
    %10 = vector.shape_cast %9 : vector<1x128xf32> to vector<1x1x128xf32>
    %11 = vector.broadcast %10 : vector<1x1x128xf32> to vector<8x8x128xf32>
    %12 = arith.mulf %8, %11 : vector<8x8x128xf32>
    %cst_10 = arith.constant dense<0.000000e+00> : vector<8x8xf32>
    %13 = vector.multi_reduction <add>, %12, %cst_10 [2] : vector<8x8x128xf32> to vector<8x8xf32>
    %cst_11 = arith.constant dense<0xFF800000> : vector<8xf32>
    %14 = vector.multi_reduction <maximumf>, %13, %cst_11 [1] : vector<8x8xf32> to vector<8xf32>
    %15 = vector.shape_cast %14 : vector<8xf32> to vector<8x1xf32>
    %16 = vector.broadcast %15 : vector<8x1xf32> to vector<8x8xf32>
    %17 = arith.subf %13, %16 : vector<8x8xf32>
    %18 = math.exp %17 : vector<8x8xf32>
    %cst_12 = arith.constant dense<0.000000e+00> : vector<8xf32>
    %19 = vector.multi_reduction <add>, %18, %cst_12 [1] : vector<8x8xf32> to vector<8xf32>
    %20 = vector.shape_cast %19 : vector<8xf32> to vector<8x1xf32>
    %21 = tpu.reciprocal %20 {approx = true} : vector<8x1xf32> -> vector<8x1xf32>
    %22 = vector.broadcast %21 : vector<8x1xf32> to vector<8x8xf32>
    %23 = arith.mulf %18, %22 : vector<8x8xf32>
    %24 = tpu.transpose %23, [1, 0] : vector<8x8xf32> -> vector<8x8xf32>
    %25 = vector.shape_cast %24 : vector<8x8xf32> to vector<8x8x1xf32>
    %c0_13 = arith.constant 0 : index
    %c0_14 = arith.constant 0 : index
    %c0_15 = arith.constant 0 : index
    %26 = vector.load %arg4[%c0_13, %c0_14, %c0_15] : memref<8x8x32xf32, #tpu.memory_space<vmem>>, vector<8x8x32xf32>
    %27 = vector.broadcast %25 : vector<8x8x1xf32> to vector<8x8x32xf32>
    %28 = arith.mulf %27, %26 : vector<8x8x32xf32>
    %cst_16 = arith.constant dense<0.000000e+00> : vector<8x32xf32>
    %29 = vector.multi_reduction <add>, %28, %cst_16 [0] : vector<8x8x32xf32> to vector<8x32xf32>
    %c0_17 = arith.constant 0 : index
    %c0_18 = arith.constant 0 : index
    %30 = vector.load %arg7[%c0_17, %c0_18] : memref<32x96xf32, #tpu.memory_space<vmem>>, vector<32x96xf32>
    %cst_19 = arith.constant dense<0.000000e+00> : vector<8x96xf32>
    %31 = tpu.matmul %29, %30, %cst_19 {dimension_numbers = #tpu.dot_dimension_numbers<[1], [0], [0], [1], [0, 0, 1, 1], [], []>} : vector<8x32xf32>, vector<32x96xf32>, vector<8x96xf32> -> vector<8x96xf32>
    %c0_20 = arith.constant 0 : index
    %c0_21 = arith.constant 0 : index
    %32 = vector.load %arg8[%c0_20, %c0_21] : memref<16x96xf32, #tpu.memory_space<vmem>>, vector<16x96xf32>
    %cst_22 = arith.constant dense<0.000000e+00> : vector<8x96xf32>
    %33 = tpu.matmul %1, %32, %cst_22 {dimension_numbers = #tpu.dot_dimension_numbers<[1], [0], [0], [1], [0, 0, 1, 1], [], []>} : vector<8x16xf32>, vector<16x96xf32>, vector<8x96xf32> -> vector<8x96xf32>
    %34 = arith.addf %31, %33 : vector<8x96xf32>
    %c0_23 = arith.constant 0 : index
    %c0_24 = arith.constant 0 : index
    %35 = vector.load %arg10[%c0_23, %c0_24] : memref<1x96xf32, #tpu.memory_space<vmem>>, vector<1x96xf32>
    %36 = vector.broadcast %35 : vector<1x96xf32> to vector<8x96xf32>
    %37 = arith.addf %34, %36 : vector<8x96xf32>
    %c0_25 = arith.constant 0 : index
    %c0_26 = arith.constant 0 : index
    %38 = vector.load %arg9[%c0_25, %c0_26] : memref<32x96xf32, #tpu.memory_space<vmem>>, vector<32x96xf32>
    %cst_27 = arith.constant dense<0.000000e+00> : vector<8x96xf32>
    %39 = tpu.matmul %0, %38, %cst_27 {dimension_numbers = #tpu.dot_dimension_numbers<[1], [0], [0], [1], [0, 0, 1, 1], [], []>} : vector<8x32xf32>, vector<32x96xf32>, vector<8x96xf32> -> vector<8x96xf32>
    %c0_28 = arith.constant 0 : index
    %c0_29 = arith.constant 0 : index
    %40 = vector.load %arg11[%c0_28, %c0_29] : memref<1x96xf32, #tpu.memory_space<vmem>>, vector<1x96xf32>
    %41 = vector.broadcast %40 : vector<1x96xf32> to vector<8x96xf32>
    %42 = arith.addf %39, %41 : vector<8x96xf32>
    %43 = vector.extract_strided_slice %37 {offsets = [0, 0], sizes = [8, 32], strides = [1, 1]} : vector<8x96xf32> to vector<8x32xf32>
    %44 = vector.extract_strided_slice %37 {offsets = [0, 32], sizes = [8, 32], strides = [1, 1]} : vector<8x96xf32> to vector<8x32xf32>
    %45 = vector.extract_strided_slice %37 {offsets = [0, 64], sizes = [8, 32], strides = [1, 1]} : vector<8x96xf32> to vector<8x32xf32>
    %46 = vector.extract_strided_slice %42 {offsets = [0, 0], sizes = [8, 32], strides = [1, 1]} : vector<8x96xf32> to vector<8x32xf32>
    %47 = vector.extract_strided_slice %42 {offsets = [0, 32], sizes = [8, 32], strides = [1, 1]} : vector<8x96xf32> to vector<8x32xf32>
    %48 = vector.extract_strided_slice %42 {offsets = [0, 64], sizes = [8, 32], strides = [1, 1]} : vector<8x96xf32> to vector<8x32xf32>
    %49 = arith.addf %43, %46 : vector<8x32xf32>
    %50 = arith.negf %49 : vector<8x32xf32>
    %51 = math.exp %50 : vector<8x32xf32>
    %cst_30 = arith.constant 1.000000e+00 : f32
    %52 = vector.broadcast %cst_30 : f32 to vector<8x32xf32>
    %53 = arith.addf %52, %51 : vector<8x32xf32>
    %54 = arith.divf %52, %53 : vector<8x32xf32>
    %55 = arith.addf %44, %47 : vector<8x32xf32>
    %56 = arith.negf %55 : vector<8x32xf32>
    %57 = math.exp %56 : vector<8x32xf32>
    %cst_31 = arith.constant 1.000000e+00 : f32
    %58 = vector.broadcast %cst_31 : f32 to vector<8x32xf32>
    %59 = arith.addf %58, %57 : vector<8x32xf32>
    %60 = arith.divf %58, %59 : vector<8x32xf32>
    %61 = arith.mulf %54, %48 : vector<8x32xf32>
    %62 = arith.addf %45, %61 : vector<8x32xf32>
    %63 = math.tanh %62 : vector<8x32xf32>
    %cst_32 = arith.constant 1.000000e+00 : f32
    %64 = vector.broadcast %cst_32 : f32 to vector<8x32xf32>
    %65 = arith.subf %64, %60 : vector<8x32xf32>
    %66 = arith.mulf %65, %63 : vector<8x32xf32>
    %67 = arith.mulf %60, %0 : vector<8x32xf32>
    %68 = arith.addf %66, %67 : vector<8x32xf32>
    %c0_33 = arith.constant 0 : index
    %c0_34 = arith.constant 0 : index
    %69 = vector.load %arg12[%c0_33, %c0_34] : memref<32x128xf32, #tpu.memory_space<vmem>>, vector<32x128xf32>
    %cst_35 = arith.constant dense<0.000000e+00> : vector<8x128xf32>
    %70 = tpu.matmul %68, %69, %cst_35 {dimension_numbers = #tpu.dot_dimension_numbers<[1], [0], [0], [1], [0, 0, 1, 1], [], []>} : vector<8x32xf32>, vector<32x128xf32>, vector<8x128xf32> -> vector<8x128xf32>
    %c0_36 = arith.constant 0 : index
    %c0_37 = arith.constant 0 : index
    %71 = vector.load %arg13[%c0_36, %c0_37] : memref<1x128xf32, #tpu.memory_space<vmem>>, vector<1x128xf32>
    %72 = vector.broadcast %71 : vector<1x128xf32> to vector<8x128xf32>
    %73 = arith.addf %70, %72 : vector<8x128xf32>
    %c0_38 = arith.constant 0 : index
    %c0_39 = arith.constant 0 : index
    %74 = vector.load %arg14[%c0_38, %c0_39] : memref<8x32xf32, #tpu.memory_space<vmem>>, vector<8x32xf32>
    tpu.vector_store %arg14[%c0_38, %c0_39], %68 {strides = array<i32>} : memref<8x32xf32, #tpu.memory_space<vmem>>, vector<8x32xf32>,
    %c0_40 = arith.constant 0 : index
    %c0_41 = arith.constant 0 : index
    %75 = vector.load %arg15[%c0_40, %c0_41] : memref<8x128xf32, #tpu.memory_space<vmem>>, vector<8x128xf32>
    tpu.vector_store %arg15[%c0_40, %c0_41], %73 {strides = array<i32>} : memref<8x128xf32, #tpu.memory_space<vmem>>, vector<8x128xf32>,
    return
  }
  func.func @transform_0(%arg0: i32) -> (i32, i32) {
    %c0_i32 = arith.constant 0 : i32
    %c0_i32_0 = arith.constant 0 : i32
    return %arg0, %c0_i32 : i32, i32
  }
  func.func @transform_1(%arg0: i32) -> (i32, i32) {
    %c0_i32 = arith.constant 0 : i32
    %c0_i32_0 = arith.constant 0 : i32
    return %arg0, %c0_i32 : i32, i32
  }
  func.func @transform_2(%arg0: i32) -> (i32, i32, i32) {
    %c0_i32 = arith.constant 0 : i32
    %c0_i32_0 = arith.constant 0 : i32
    %c0_i32_1 = arith.constant 0 : i32
    return %arg0, %c0_i32, %c0_i32_0 : i32, i32, i32
  }
  func.func @transform_3(%arg0: i32) -> (i32, i32, i32) {
    %c0_i32 = arith.constant 0 : i32
    %c0_i32_0 = arith.constant 0 : i32
    %c0_i32_1 = arith.constant 0 : i32
    return %c0_i32, %arg0, %c0_i32_0 : i32, i32, i32
  }
  func.func @transform_4(%arg0: i32) -> (i32, i32) {
    %c0_i32 = arith.constant 0 : i32
    %c0_i32_0 = arith.constant 0 : i32
    %c0_i32_1 = arith.constant 0 : i32
    return %c0_i32, %c0_i32_0 : i32, i32
  }
  func.func @transform_5(%arg0: i32) -> (i32, i32) {
    %c0_i32 = arith.constant 0 : i32
    %c0_i32_0 = arith.constant 0 : i32
    %c0_i32_1 = arith.constant 0 : i32
    return %c0_i32, %c0_i32_0 : i32, i32
  }
  func.func @transform_6(%arg0: i32) -> (i32, i32) {
    %c0_i32 = arith.constant 0 : i32
    %c0_i32_0 = arith.constant 0 : i32
    %c0_i32_1 = arith.constant 0 : i32
    return %c0_i32, %c0_i32_0 : i32, i32
  }
  func.func @transform_7(%arg0: i32) -> (i32, i32) {
    %c0_i32 = arith.constant 0 : i32
    %c0_i32_0 = arith.constant 0 : i32
    %c0_i32_1 = arith.constant 0 : i32
    return %c0_i32, %c0_i32_0 : i32, i32
  }
  func.func @transform_8(%arg0: i32) -> (i32, i32) {
    %c0_i32 = arith.constant 0 : i32
    %c0_i32_0 = arith.constant 0 : i32
    %c0_i32_1 = arith.constant 0 : i32
    return %c0_i32, %c0_i32_0 : i32, i32
  }
  func.func @transform_9(%arg0: i32) -> (i32, i32) {
    %c0_i32 = arith.constant 0 : i32
    %c0_i32_0 = arith.constant 0 : i32
    %c0_i32_1 = arith.constant 0 : i32
    return %c0_i32, %c0_i32_0 : i32, i32
  }
  func.func @transform_10(%arg0: i32) -> (i32, i32) {
    %c0_i32 = arith.constant 0 : i32
    %c0_i32_0 = arith.constant 0 : i32
    %c0_i32_1 = arith.constant 0 : i32
    return %c0_i32, %c0_i32_0 : i32, i32
  }
  func.func @transform_11(%arg0: i32) -> (i32, i32) {
    %c0_i32 = arith.constant 0 : i32
    %c0_i32_0 = arith.constant 0 : i32
    %c0_i32_1 = arith.constant 0 : i32
    return %c0_i32, %c0_i32_0 : i32, i32
  }
  func.func @transform_12(%arg0: i32) -> (i32, i32) {
    %c0_i32 = arith.constant 0 : i32
    %c0_i32_0 = arith.constant 0 : i32
    %c0_i32_1 = arith.constant 0 : i32
    return %c0_i32, %c0_i32_0 : i32, i32
  }
  func.func @transform_13(%arg0: i32) -> (i32, i32) {
    %c0_i32 = arith.constant 0 : i32
    %c0_i32_0 = arith.constant 0 : i32
    return %arg0, %c0_i32 : i32, i32
  }
  func.func @transform_14(%arg0: i32) -> (i32, i32) {
    %c0_i32 = arith.constant 0 : i32
    %c0_i32_0 = arith.constant 0 : i32
    return %arg0, %c0_i32 : i32, i32
  }
}

</mosaic_0001>

<bundles_post_ra>
// kernel: tpu_custom_call.1
= control target key start
LH: loop header
LB: loop body
LE: loop exit
PB: predicated region body
PF: predicated region fallthrough
CT: control target
= control target key end

     0   :  { %20 = vsyncpa [#allocation3], 0  ;;  %s2027_s0 = inlined_call_operand.hbm [shape: f32[8,32], index: 0, kind: input, shape index: {}]   ;;  %s2028_s1 = inlined_call_operand.hbm [shape: f32[8,16], index: 1, kind: input, shape index: {}]   ;;  %s2029_s2 = inlined_call_operand.hbm [shape: f32[8,8,128], index: 2, kind: input, shape index: {}]   ;;  %s2030_s3 = inlined_call_operand.hbm [shape: f32[8,8,32], index: 3, kind: input, shape index: {}]   ;;  %s2031_s4 = inlined_call_operand.hbm [shape: f32[32,128], index: 4, kind: input, shape index: {}]   ;;  %s2032_s5 = inlined_call_operand.vmem [shape: f32[1,128], index: 5, kind: input, shape index: {}]   ;;  %s2033_s6 = inlined_call_operand.hbm [shape: f32[32,96], index: 6, kind: input, shape index: {}]   ;;  %s2034_s7 = inlined_call_operand.hbm [shape: f32[16,96], index: 7, kind: input, shape index: {}]   ;;  %s2035_s8 = inlined_call_operand.hbm [shape: f32[32,96], index: 8, kind: input, shape index: {}]   ;;  %s2036_s9 = inlined_call_operand.vmem [shape: f32[1,96], index: 9, kind: input, shape index: {}]   ;;  %s2037_s10 = inlined_call_operand.vmem [shape: f32[1,96], index: 10, kind: input, shape index: {}]   ;;  %s2038_s11 = inlined_call_operand.vmem [shape: f32[32,128], index: 11, kind: input, shape index: {}]   ;;  %s2039_s12 = inlined_call_operand.vmem [shape: f32[1,128], index: 12, kind: input, shape index: {}]   ;;  %s2040_s13 = inlined_call_operand.hbm [shape: f32[8,32], index: 13, kind: output, shape index: {0}]   ;;  %s2041_s14 = inlined_call_operand.hbm [shape: f32[8,128], index: 14, kind: output, shape index: {1}]  }
   0x1   :  { %21 = vsyncpa [#allocation6], 0 }
   0x2   :  { %22 = vsyncpa [#allocation9], 0 }
   0x3   :  { %23 = vsyncpa [#allocation12], 0 }
   0x4   :  { %24 = vsyncpa [#allocation15], 0 }
   0x5   :  { %25 = vsyncpa [#allocation4], 0 }
   0x6   :  { %26 = vsyncpa [#allocation18], 0  ;;  %s1620_s29 = smov [#allocation5]   ;;  %s1386_s17 = scalar_lea.hbm %s2028_s1, 128 }
   0x7   :  { %s43_s30 = sshll.u32 %s1620_s29, 4  ;;  %p1387_p0 = scmp.ne.s32.totalorder %s2028_s1, %s1386_s17  ;;  %s44_s30 = int_to_ptr.vmem [resolvable:$true] %s43_s30 }
   0x8   :  { %p1390_p1 = scmp.lt.u32.totalorder %s1386_s17, %s2028_s1 }
   0xa   :  { %p1392_p2 = pnand %p1390_p1, %p1387_p0 }
   0xc   :  { %1395 = shalt.err (!%p1392_p2)
}
   0xd   :  { %s1396_s22 = scalar_lea.vmem %s44_s30, 128  ;;  %p1401_p4 = scmp.lt.s32.totalorder %s44_s30, %s44_s30 }
   0xe   :  { %p1397_p3 = scmp.ne.s32.totalorder %s44_s30, %s1396_s22  ;;  %p1402_p5 = scmp.lt.s32.totalorder %s1396_s22, %s1396_s22 }
  0x10   :  { %p1403_p6 = por %p1402_p5, %p1401_p4 }
  0x12   :  { %p1404_p7 = pnand %p1403_p6, %p1397_p3 }
  0x14   :  { %1407 = shalt.err (!%p1404_p7)
}
  0x15   :  { %46 = dma.hbm_to_vmem [thread:$0]  %s2028_s1, 128, %s44_s30, [#allocation6]  }
  0x16   :  { %s1621_s25 = smov [#allocation8]   ;;  %s1622_s27 = smov [#allocation11]  }
  0x17   :  { %s64_s26 = sshll.u32 %s1621_s25, 4  ;;  %s90_s28 = sshll.u32 %s1622_s27, 4  ;;  %s65_s26 = int_to_ptr.vmem [resolvable:$true] %s64_s26  ;;  %s91_s28 = int_to_ptr.vmem [resolvable:$true] %s90_s28 }
  0x18   :  { %s1408_s16 = scalar_lea.hbm %s2030_s3, 1024 }
  0x19   :  { %p1409_p8 = scmp.ne.s32.totalorder %s2030_s3, %s1408_s16  ;;  %p1412_p9 = scmp.lt.u32.totalorder %s1408_s16, %s2030_s3 }
  0x1b   :  { %p1414_p10 = pnand %p1412_p9, %p1409_p8 }
  0x1d   :  { %1417 = shalt.err (!%p1414_p10)
}
  0x1e   :  { %s1418_s1 = scalar_lea.vmem %s65_s26, 1024  ;;  %p1423_p12 = scmp.lt.s32.totalorder %s65_s26, %s65_s26 }
  0x1f   :  { %p1419_p11 = scmp.ne.s32.totalorder %s65_s26, %s1418_s1  ;;  %p1424_p13 = scmp.lt.s32.totalorder %s1418_s1, %s1418_s1 }
  0x21   :  { %p1425_p0 = por %p1424_p13, %p1423_p12 }
  0x23   :  { %p1426_p1 = pnand %p1425_p0, %p1419_p11 }
  0x25   :  { %1429 = shalt.err (!%p1426_p1)
}
  0x26   :  { %s1623_s30 = smov 128   ;;  %s1624_s21 = smov 8  }
  0x27   :  { %70 = dma.hbm_to_vmem [thread:$0]  %s2030_s3, 1024, %s65_s26, [#allocation9], %s1623_s30, %s1623_s30, %s1624_s21  }
  0x28   :  { %s1430_s27 = scalar_lea.hbm %s2033_s6, 512 }
  0x29   :  { %p1431_p2 = scmp.ne.s32.totalorder %s2033_s6, %s1430_s27  ;;  %p1434_p3 = scmp.lt.u32.totalorder %s1430_s27, %s2033_s6 }
  0x2b   :  { %p1436_p4 = pnand %p1434_p3, %p1431_p2 }
  0x2d   :  { %1439 = shalt.err (!%p1436_p4)
}
  0x2e   :  { %s1440_s18 = scalar_lea.vmem %s91_s28, 512  ;;  %p1445_p6 = scmp.lt.s32.totalorder %s91_s28, %s91_s28 }
  0x2f   :  { %p1441_p5 = scmp.ne.s32.totalorder %s91_s28, %s1440_s18  ;;  %p1446_p7 = scmp.lt.s32.totalorder %s1440_s18, %s1440_s18 }
  0x31   :  { %p1447_p8 = por %p1446_p7, %p1445_p6 }
  0x33   :  { %p1448_p9 = pnand %p1447_p8, %p1441_p5 }
  0x35   :  { %1451 = shalt.err (!%p1448_p9)
}
  0x36   :  { %96 = dma.hbm_to_vmem [thread:$0]  %s2033_s6, 512, %s91_s28, [#allocation12], %s1623_s30, %s1623_s30, %s1624_s21  }
  0x37   :  { %s1625_s19 = smov [#allocation2]   ;;  %s1626_s1 = smov [#allocation7]  }
  0x38   :  { %s33_s20 = sshll.u32 %s1625_s19, 4  ;;  %s52_s22 = sshll.u32 %s1626_s1, 4  ;;  %s34_s20 = int_to_ptr.vmem [resolvable:$true] %s33_s20  ;;  %s53_s22 = int_to_ptr.vmem [resolvable:$true] %s52_s22 }
  0x39   :  { %s1452_s25 = scalar_lea.hbm %s2027_s0, 128 }
  0x3a   :  { %p1453_p10 = scmp.ne.s32.totalorder %s2027_s0, %s1452_s25  ;;  %p1456_p11 = scmp.lt.u32.totalorder %s1452_s25, %s2027_s0 }
  0x3c   :  { %p1458_p12 = pnand %p1456_p11, %p1453_p10 }
  0x3e   :  { %1461 = shalt.err (!%p1458_p12)
}
  0x3f   :  { %s1462_s6 = scalar_lea.vmem %s34_s20, 128  ;;  %p1467_p0 = scmp.lt.s32.totalorder %s34_s20, %s34_s20 }
  0x40   :  { %p1463_p13 = scmp.ne.s32.totalorder %s34_s20, %s1462_s6  ;;  %p1468_p1 = scmp.lt.s32.totalorder %s1462_s6, %s1462_s6 }
  0x42   :  { %p1469_p2 = por %p1468_p1, %p1467_p0 }
  0x44   :  { %p1470_p3 = pnand %p1469_p2, %p1463_p13 }
  0x46   :  { %1473 = shalt.err (!%p1470_p3)
}
  0x47   :  { %36 = dma.hbm_to_vmem [thread:$0]  %s2027_s0, 128, %s34_s20, [#allocation3]  }
  0x48   :  { %s1474_s26 = scalar_lea.hbm %s2029_s2, 1024 }
  0x49   :  { %p1475_p4 = scmp.ne.s32.totalorder %s2029_s2, %s1474_s26  ;;  %p1478_p5 = scmp.lt.u32.totalorder %s1474_s26, %s2029_s2 }
  0x4b   :  { %p1480_p6 = pnand %p1478_p5, %p1475_p4 }
  0x4d   :  { %1483 = shalt.err (!%p1480_p6)
}
  0x4e   :  { %s1484_s25 = scalar_lea.vmem %s53_s22, 1024  ;;  %p1489_p8 = scmp.lt.s32.totalorder %s53_s22, %s53_s22 }
  0x4f   :  { %p1485_p7 = scmp.ne.s32.totalorder %s53_s22, %s1484_s25  ;;  %p1490_p9 = scmp.lt.s32.totalorder %s1484_s25, %s1484_s25 }
  0x51   :  { %p1491_p10 = por %p1490_p9, %p1489_p8 }
  0x53   :  { %p1492_p11 = pnand %p1491_p10, %p1485_p7 }
  0x55   :  { %1495 = shalt.err (!%p1492_p11)
}
  0x56   :  { %58 = dma.hbm_to_vmem [thread:$0]  %s2029_s2, 1024, %s53_s22, [#allocation6], %s1623_s30, %s1623_s30, %s1624_s21  }
  0x57   :  { %s1627_s27 = smov [#allocation10]   ;;  %s1628_s15 = smov [#allocation13]  }
  0x58   :  { %s76_s29 = sshll.u32 %s1627_s27, 4  ;;  %s102_s16 = sshll.u32 %s1628_s15, 4  ;;  %s77_s29 = int_to_ptr.vmem [resolvable:$true] %s76_s29  ;;  %s103_s16 = int_to_ptr.vmem [resolvable:$true] %s102_s16 }
  0x59   :  { %s1496_s17 = scalar_lea.hbm %s2031_s4, 512 }
  0x5a   :  { %p1497_p12 = scmp.ne.s32.totalorder %s2031_s4, %s1496_s17  ;;  %p1500_p13 = scmp.lt.u32.totalorder %s1496_s17, %s2031_s4 }
  0x5c   :  { %p1502_p0 = pnand %p1500_p13, %p1497_p12 }
  0x5e   :  { %1505 = shalt.err (!%p1502_p0)
}
  0x5f   :  { %s1506_s2 = scalar_lea.vmem %s77_s29, 512  ;;  %p1511_p2 = scmp.lt.s32.totalorder %s77_s29, %s77_s29 }
  0x60   :  { %p1507_p1 = scmp.ne.s32.totalorder %s77_s29, %s1506_s2  ;;  %p1512_p3 = scmp.lt.s32.totalorder %s1506_s2, %s1506_s2 }
  0x62   :  { %p1513_p4 = por %p1512_p3, %p1511_p2 }
  0x64   :  { %p1514_p5 = pnand %p1513_p4, %p1507_p1 }
  0x66   :  { %1517 = shalt.err (!%p1514_p5)
}
  0x67   :  { %82 = dma.hbm_to_vmem [thread:$0]  %s2031_s4, 512, %s77_s29, [#allocation9], %s1623_s30, %s1623_s30, %s1624_s21  }
  0x68   :  { %s1518_s25 = scalar_lea.hbm %s2034_s7, 256 }
  0x69   :  { %p1519_p6 = scmp.ne.s32.totalorder %s2034_s7, %s1518_s25  ;;  %p1522_p7 = scmp.lt.u32.totalorder %s1518_s25, %s2034_s7 }
  0x6b   :  { %p1524_p8 = pnand %p1522_p7, %p1519_p6 }
  0x6d   :  { %1527 = shalt.err (!%p1524_p8)
}
  0x6e   :  { %s1528_s6 = scalar_lea.vmem %s103_s16, 256  ;;  %p1533_p10 = scmp.lt.s32.totalorder %s103_s16, %s103_s16 }
  0x6f   :  { %p1529_p9 = scmp.ne.s32.totalorder %s103_s16, %s1528_s6  ;;  %p1534_p11 = scmp.lt.s32.totalorder %s1528_s6, %s1528_s6 }
  0x71   :  { %p1535_p12 = por %p1534_p11, %p1533_p10 }
  0x73   :  { %p1536_p13 = pnand %p1535_p12, %p1529_p9 }
  0x75   :  { %1539 = shalt.err (!%p1536_p13)
}
  0x76   :  { %108 = dma.hbm_to_vmem [thread:$0]  %s2034_s7, 256, %s103_s16, [#allocation12], %s1623_s30, %s1623_s30, %s1624_s21  }
  0x77   :  { %s1629_s28 = smov [#allocation14]   ;;  %s1540_s26 = scalar_lea.hbm %s2035_s8, 512 }
  0x78   :  { %s114_s17 = sshll.u32 %s1629_s28, 4  ;;  %p1541_p0 = scmp.ne.s32.totalorder %s2035_s8, %s1540_s26  ;;  %s115_s17 = int_to_ptr.vmem [resolvable:$true] %s114_s17 }
  0x79   :  { %p1544_p1 = scmp.lt.u32.totalorder %s1540_s26, %s2035_s8 }
  0x7b   :  { %p1546_p2 = pnand %p1544_p1, %p1541_p0 }
  0x7d   :  { %1549 = shalt.err (!%p1546_p2)
}
  0x7e   :  { %s1550_s23 = scalar_lea.vmem %s115_s17, 512  ;;  %p1555_p4 = scmp.lt.s32.totalorder %s115_s17, %s115_s17 }
  0x7f   :  { %p1551_p3 = scmp.ne.s32.totalorder %s115_s17, %s1550_s23  ;;  %p1556_p5 = scmp.lt.s32.totalorder %s1550_s23, %s1550_s23 }
  0x81   :  { %p1557_p6 = por %p1556_p5, %p1555_p4 }
  0x83   :  { %p1558_p7 = pnand %p1557_p6, %p1551_p3 }
  0x85   :  { %1561 = shalt.err (!%p1558_p7)
}
  0x86   :  { %120 = dma.hbm_to_vmem [thread:$0]  %s2035_s8, 512, %s115_s17, [#allocation15], %s1623_s30, %s1623_s30, %s1624_s21  }
  0x87   :  { %1606 = dma.done.wait [#allocation3], 128  }
  0x88   :  { %1607 = vsyncadd [#allocation3], 4294967168 }
  0x89   :  { %1608 = dma.done.wait [#allocation6], 1152  }
  0x8a   :  { %1609 = vsyncadd [#allocation6], 4294966144 }
  0x8b   :  { %1610 = dma.done.wait [#allocation9], 1536  }
  0x8c   :  { %1611 = vsyncadd [#allocation9], 4294965760 }
  0x8d   :  { %1612 = dma.done.wait [#allocation12], 768  }
  0x8e   :  { %1613 = vsyncadd [#allocation12], 4294966528 }
  0x8f   :  { %1614 = dma.done.wait [#allocation15], 512  }
  0x90   :  { %1615 = vsyncadd [#allocation15], 4294966784  ;;  %v1630_v0 = vmov 0.0|0.0   ;;  %vm1631_vm0 = vmmov 0   ;;  %v1632_v1 = vmov 0.0   ;;  %v155_v2 = vld [vmem:[#allocation10] sm:$0xff]  ;;  %v246_v11 = vlaneseq }
  0x91   :  { %1297 = vmatprep.subr.bf16.mxu0 %v1630_v0  ;;  %1254 = vmatprep.mubr.msk.f32.mxu0 %vm1631_vm0, %v1632_v1  ;;  %v156_v3 = vld [vmem:[#allocation10 + $0x8] sm:$0xff]  ;;  %v157_v4 = vld [vmem:[#allocation10 + $0x10] sm:$0xff]  ;;  %v158_v6 = vld [vmem:[#allocation10 + $0x18] sm:$0xff]  ;;  %vm159_vm1 = vcmask 261120   ;;  %v1633_v9 = vmov 1966171168  }
  0x92   :  { %1303 = vmatprep.subr.bf16.mxu1 %v1630_v0  ;;  %1261 = vmatprep.mubr.msk.f32.mxu1 %vm1631_vm0, %v1632_v1  ;;  %v1298_v5 = vpack.c.bf16 %v156_v3, %v155_v2  ;;  %v1301_v7 = vpack.c.bf16 %v158_v6, %v157_v4  ;;  %v1836_v8 = vld [vmem:[#allocation2] sm:$0xff]  ;;  %v244_v10 = vunpack.c.l.s4 %v1633_v9  ;;  %v1844_v13 = vshrl.u32 %v246_v11, 7  ;;  %v233_v23 = vld [vmem:[#allocation7] sm:$0xff]  ;;  %v234_v29 = vld [vmem:[#allocation7 + $0x8] sm:$0xff]  ;;  %s1635_s24 = smov 64   ;;  %s1636_s28 = smov 96  }
  0x93   :  { %v235_v30 = vld [vmem:[#allocation7 + $0x10] sm:$0xff]  ;;  %v236_v34 = vld [vmem:[#allocation7 + $0x18] sm:$0xff]  ;;  %v237_v39 = vld [vmem:[#allocation7 + $0x20] sm:$0xff]  ;;  %vm420_vm2 = vcmask 1041409   ;;  %vm422_vm3 = vcmask 1042434   ;;  %vm424_vm4 = vcmask 1043459  }
  0x94   :  { %1299 = vmatpush3.bf16.msra.mxu0 %v1298_v5  ;;  %v245_v12 = vunpack.c.0.s8 %v244_v10  ;;  %v1848_v19 = vsub.s32 0, %v1844_v13  ;;  %v238_v46 = vld [vmem:[#allocation7 + $0x28] sm:$0xff]  ;;  %v239_v49 = vld [vmem:[#allocation7 + $0x30] sm:$0xff]  ;;  %v240_v53 = vld [vmem:[#allocation7 + $0x38] sm:$0xff]  ;;  %vm426_vm5 = vcmask 1044484   ;;  %vm428_vm6 = vcmask 1045509  }
  0x95   :  { %1300 = vmatprep.subr.bf16.mxu0 %v1630_v0  ;;  %v1214_v54 = vld [vmem:[%s2032_s5] ss:$0 sm:$0xff]  ;;  %vm430_vm7 = vcmask 1046534   ;;  %vm432_vm8 = vcmask 1047559   ;;  %vm435_vm9 = vcmask 64512   ;;  %vm826_vm10 = vcmask 130048  }
  0x96   :  { %v248_v14 = vsub.s32 %v245_v12, %v1844_v13  ;;  %v387_v12 = vand.u32 127, %v246_v11  ;;  %s1637_s17 = smov 32  }
  0x98   :  { %1302 = vmatpush3.bf16.msra.mxu0 %v1301_v7 }
  0x99   :  { %1312 = vmatprep.subr.bf16.mxu0 %v1630_v0 }
  0x9b   :  { %1255 = vmatmul.mubr.msk.f32.vlgmr.msra.gmra.mrb[0].mxu0 %vm159_vm1, %v1836_v8 }
  0x9c   :  { %1283 = vmatprep.mubr.msk.f32.mxu0 %vm1631_vm0, %v1632_v1 }
 0x16e   :  { %v229_v15 = vpop.f32.mrb[0].mxu0 }
 0x16f   :  { %v242_v16 = vcombine.high %v229_v15, %v229_v15  ;;  %v249_v17 = vrot.slane %v229_v15, %v248_v14  ;;  %v1256_v18 = vpop.f32.mrb[1].mxu0  ;;  %v1863_v15 = vsub.s32 %v387_v12, %v1844_v13 }
 0x171   :  { %v256_v20 = vrot.slane %v242_v16, %v248_v14  ;;  %v257_v21 = vcombine.high %v249_v17, %v249_v17  ;;  %v265_v22 = vrot.slane %v249_v17, %v248_v14 }
 0x173   :  { %v258_v24 = vcombine.high %v256_v20, %v256_v20  ;;  %v272_v25 = vrot.slane %v256_v20, %v248_v14  ;;  %v279_v26 = vrot.slane %v257_v21, %v248_v14  ;;  %v287_v27 = vcombine.high %v265_v22, %v265_v22 }
 0x174   :  { %v294_v28 = vrot.slane %v265_v22, %v1848_v19 }
 0x175   :  { %v286_v31 = vrot.slane %v258_v24, %v248_v14  ;;  %v289_v32 = vcombine.high %v279_v26, %v279_v26  ;;  %v298_v33 = vrot.slane %v279_v26, %v1848_v19  ;;  %v288_v35 = vcombine.high %v272_v25, %v272_v25 }
 0x176   :  { %v302_v36 = vrot.slane %v287_v27, %v1848_v19  ;;  %v310_v37 = vrot.slane %v272_v25, %v1848_v19  ;;  %v331_v38 = vadd.f32 %v294_v28, %v233_v23 }
 0x177   :  { %v306_v40 = vrot.slane %v289_v32, %v1848_v19  ;;  %v332_v41 = vadd.f32 %v298_v33, %v234_v29  ;;  %v290_v43 = vcombine.high %v286_v31, %v286_v31  ;;  %v314_v44 = vrot.slane %v286_v31, %v1848_v19 }
 0x178   :  { %v333_v42 = vadd.f32 %v302_v36, %v235_v30  ;;  %1346 = vtanh.f32 %v331_v38  ;;  %v318_v47 = vrot.slane %v288_v35, %v1848_v19  ;;  %v335_v48 = vadd.f32 %v310_v37, %v237_v39 }
 0x179   :  { %v334_v45 = vadd.f32 %v306_v40, %v236_v34  ;;  %1348 = vtanh.f32 %v332_v41  ;;  %v322_v50 = vrot.slane %v290_v43, %v1848_v19  ;;  %v336_v51 = vadd.f32 %v314_v44, %v238_v46 }
 0x17a   :  { %1350 = vtanh.f32 %v333_v42  ;;  %v337_v52 = vadd.f32 %v318_v47, %v239_v49  ;;  %v1634_v39 = vmov 0   ;;  %v1882_v40 = vsub.s32 1, %v1844_v13 }
 0x17b   :  { %1352 = vtanh.f32 %v334_v45  ;;  %v338_v55 = vadd.f32 %v322_v50, %v240_v53  ;;  %1345 = vset.pattern.permute.xlu0 %v1634_v39  ;;  %1344 = vset.pattern.permute.xlu1 %v1634_v39  ;;  %v1885_v41 = vsub.s32 2, %v1844_v13  ;;  %v1888_v42 = vsub.s32 3, %v1844_v13 }
 0x17c   :  { %1354 = vtanh.f32 %v335_v48  ;;  %v1894_v47 = vsub.s32 4, %v1844_v13 }
 0x17d   :  { %1356 = vtanh.f32 %v336_v51 }
 0x17e   :  { %1358 = vtanh.f32 %v337_v52 }
 0x17f   :  { %1360 = vtanh.f32 %v338_v55 }
 0x182   :  { %v1347_v56 = vpop.eup %1346 }
 0x183   :  { %v354_v57 = vmul.f32 %v1347_v56, %v1214_v54  ;;  %v1349_v58 = vpop.eup %1348 }
 0x184   :  { %v1351_v59 = vpop.eup %1350  ;;  %v355_v62 = vmul.f32 %v1349_v58, %v1214_v54  ;;  %v1902_v58 = vsub.s32 6, %v1844_v13 }
 0x185   :  { %362 = vadd.xlane.f32.xlu0 %v354_v57  ;;  %v356_v60 = vmul.f32 %v1351_v59, %v1214_v54  ;;  %v1353_v61 = vpop.eup %1352 }
 0x186   :  { %v1355_v63 = vpop.eup %1354  ;;  %v357_v2 = vmul.f32 %v1353_v61, %v1214_v54 }
 0x187   :  { %366 = vadd.xlane.f32.xlu1 %v356_v60  ;;  %v1357_v3 = vpop.eup %1356  ;;  %v358_v4 = vmul.f32 %v1355_v63, %v1214_v54 }
 0x188   :  { %v1359_v5 = vpop.eup %1358  ;;  %v359_v6 = vmul.f32 %v1357_v3, %v1214_v54 }
 0x189   :  { %364 = vadd.xlane.f32.xlu0 %v355_v62  ;;  %v1361_v7 = vpop.eup %1360  ;;  %v360_v9 = vmul.f32 %v1359_v5, %v1214_v54  ;;  %v1906_v62 = vsub.s32 7, %v1844_v13 }
 0x18a   :  { %v361_v10 = vmul.f32 %v1361_v7, %v1214_v54  ;;  %v1898_v54 = vsub.s32 5, %v1844_v13 }
 0x18b   :  { %368 = vadd.xlane.f32.xlu1 %v357_v2 }
 0x18d   :  { %370 = vadd.xlane.f32.xlu0 %v358_v4 }
 0x18f   :  { %372 = vadd.xlane.f32.xlu1 %v359_v6 }
 0x191   :  { %374 = vadd.xlane.f32.xlu0 %v360_v9 }
 0x193   :  { %376 = vadd.xlane.f32.xlu1 %v361_v10 }
 0x212   :  { %v363_v14 = vpop.xlane.xlu0 %362 }
 0x213   :  { %v391_v18 = vrot.slane %v363_v14, %v1863_v15 }
 0x214   :  { %v367_v16 = vpop.xlane.xlu1 %366 }
 0x215   :  { %v399_v21 = vrot.slane %v367_v16, %v1863_v15 }
 0x216   :  { %v365_v17 = vpop.xlane.xlu0 %364 }
 0x217   :  { %v395_v20 = vrot.slane %v365_v17, %v1863_v15 }
 0x218   :  { %v369_v23 = vpop.xlane.xlu1 %368 }
 0x219   :  { %v421_v22 = vsel %vm420_vm2, %v395_v20, %v391_v18  ;;  %v403_v24 = vrot.slane %v369_v23, %v1863_v15 }
 0x21a   :  { %v423_v11 = vsel %vm422_vm3, %v399_v21, %v421_v22  ;;  %v371_v25 = vpop.xlane.xlu0 %370 }
 0x21b   :  { %v407_v26 = vrot.slane %v371_v25, %v1863_v15  ;;  %v425_v27 = vsel %vm424_vm4, %v403_v24, %v423_v11 }
 0x21c   :  { %v373_v29 = vpop.xlane.xlu1 %372 }
 0x21d   :  { %v427_v28 = vsel %vm426_vm5, %v407_v26, %v425_v27  ;;  %v411_v30 = vrot.slane %v373_v29, %v1863_v15 }
 0x21e   :  { %v375_v31 = vpop.xlane.xlu0 %374 }
 0x21f   :  { %v415_v32 = vrot.slane %v375_v31, %v1863_v15  ;;  %v429_v33 = vsel %vm428_vm6, %v411_v30, %v427_v28 }
 0x220   :  { %v377_v34 = vpop.xlane.xlu1 %376 }
 0x221   :  { %v431_v35 = vsel %vm430_vm7, %v415_v32, %v429_v33  ;;  %v419_v36 = vrot.slane %v377_v34, %v1863_v15 }
 0x223   :  { %v433_v37 = vsel %vm432_vm8, %v419_v36, %v431_v35 }
 0x224   :  { %v436_v38 = vsel %vm435_vm9, %v433_v37, -inf }
 0x225   :  { %437 = vmax.xlane.f32.xlu0 %v436_v38 }
 0x2b2   :  { %v438_v43 = vpop.xlane.xlu0 %437 }
 0x2b3   :  { %v443_v44 = vrot.slane %v438_v43, %v1848_v19  ;;  %v447_v45 = vrot.slane %v438_v43, %v1882_v40  ;;  %v451_v46 = vrot.slane %v438_v43, %v1885_v41  ;;  %v455_v48 = vrot.slane %v438_v43, %v1888_v42 }
 0x2b4   :  { %v459_v55 = vrot.slane %v438_v43, %v1894_v47  ;;  %v463_v59 = vrot.slane %v438_v43, %v1898_v54  ;;  %v467_v63 = vrot.slane %v438_v43, %v1902_v58  ;;  %v471_v6 = vrot.slane %v438_v43, %v1906_v62 }
 0x2b5   :  { %v480_v49 = vsub.f32 %v363_v14, %v443_v44  ;;  %v481_v50 = vsub.f32 %v365_v17, %v447_v45  ;;  %v482_v51 = vsub.f32 %v367_v16, %v451_v46  ;;  %v483_v56 = vsub.f32 %v369_v23, %v455_v48 }
 0x2b6   :  { %v484_v60 = vsub.f32 %v371_v25, %v459_v55  ;;  %v485_v2 = vsub.f32 %v373_v29, %v463_v59  ;;  %v486_v7 = vsub.f32 %v375_v31, %v467_v63  ;;  %v487_v12 = vsub.f32 %v377_v34, %v471_v6 }
 0x2b7   :  { %v488_v52 = vmul.f32 1.442695, %v480_v49  ;;  %v490_v53 = vmul.f32 1.442695, %v481_v50  ;;  %v492_v57 = vmul.f32 1.442695, %v482_v51 }
 0x2b8   :  { %v494_v61 = vmul.f32 1.442695, %v483_v56  ;;  %v496_v3 = vmul.f32 1.442695, %v484_v60  ;;  %v498_v9 = vmul.f32 1.442695, %v485_v2 }
 0x2b9   :  { %1362 = vpow2.f32 %v488_v52  ;;  %v500_v13 = vmul.f32 1.442695, %v486_v7  ;;  %v502_v16 = vmul.f32 1.442695, %v487_v12 }
 0x2ba   :  { %1364 = vpow2.f32 %v490_v53 }
 0x2bb   :  { %1366 = vpow2.f32 %v492_v57 }
 0x2bc   :  { %1368 = vpow2.f32 %v494_v61 }
 0x2bd   :  { %1370 = vpow2.f32 %v496_v3 }
 0x2be   :  { %1372 = vpow2.f32 %v498_v9 }
 0x2bf   :  { %1374 = vpow2.f32 %v500_v13 }
 0x2c0   :  { %1376 = vpow2.f32 %v502_v16 }
 0x2c3   :  { %v1363_v4 = vpop.eup %1362 }
 0x2c4   :  { %v1365_v5 = vpop.eup %1364  ;;  %513 = vperm.xlu1 %1344, %v1363_v4  }
 0x2c5   :  { %516 = vperm.xlu0 %1345, %v1365_v5   ;;  %v1367_v10 = vpop.eup %1366 }
 0x2c6   :  { %v1369_v14 = vpop.eup %1368 }
 0x2c7   :  { %v1371_v17 = vpop.eup %1370 }
 0x2c8   :  { %519 = vperm.xlu1 %1344, %v1367_v10   ;;  %v1373_v18 = vpop.eup %1372 }
 0x2c9   :  { %v1375_v20 = vpop.eup %1374 }
 0x2ca   :  { %v1377_v21 = vpop.eup %1376 }
 0x2cc   :  { %522 = vperm.xlu1 %1344, %v1369_v14  }
 0x2d0   :  { %525 = vperm.xlu1 %1344, %v1371_v17  }
 0x2d4   :  { %528 = vperm.xlu1 %1344, %v1373_v18  }
 0x2d8   :  { %531 = vperm.xlu1 %1344, %v1375_v20  }
 0x2dc   :  { %534 = vperm.xlu1 %1344, %v1377_v21  }
 0x343   :  { %v514_v22 = vpop.permute.xlu1 %513 }
 0x344   :  { %v517_v25 = vpop.permute.xlu0 %516  ;;  %v539_v28 = vrot.slane %v514_v22, %v1863_v15 }
 0x345   :  { %v543_v27 = vrot.slane %v517_v25, %v1863_v15 }
 0x347   :  { %v520_v23 = vpop.permute.xlu1 %519  ;;  %v568_v33 = vsel %vm420_vm2, %v543_v27, %v539_v28 }
 0x348   :  { %v547_v29 = vrot.slane %v520_v23, %v1863_v15 }
 0x34a   :  { %v569_v35 = vsel %vm422_vm3, %v547_v29, %v568_v33 }
 0x34b   :  { %v523_v11 = vpop.permute.xlu1 %522 }
 0x34c   :  { %v551_v30 = vrot.slane %v523_v11, %v1863_v15 }
 0x34e   :  { %v570_v37 = vsel %vm424_vm4, %v551_v30, %v569_v35  ;;  %v982_v35 = vld [vmem:[#allocation14 + $0x8] sm:$0xff] }
 0x34f   :  { %v526_v24 = vpop.permute.xlu1 %525 }
 0x350   :  { %v555_v31 = vrot.slane %v526_v24, %v1863_v15 }
 0x352   :  { %v571_v38 = vsel %vm426_vm5, %v555_v31, %v570_v37 }
 0x353   :  { %v529_v26 = vpop.permute.xlu1 %528 }
 0x354   :  { %v559_v34 = vrot.slane %v529_v26, %v1863_v15 }
 0x356   :  { %v572_v43 = vsel %vm428_vm6, %v559_v34, %v571_v38  ;;  %v981_v34 = vld [vmem:[#allocation14] sm:$0xff]  ;;  %v984_v38 = vld [vmem:[#allocation14 + $0x18] sm:$0xff] }
 0x357   :  { %v532_v32 = vpop.permute.xlu1 %531  ;;  %v1313_v37 = vpack.c.bf16 %v982_v35, %v981_v34 }
 0x358   :  { %v563_v36 = vrot.slane %v532_v32, %v1863_v15 }
 0x359   :  { %1314 = vmatpush3.bf16.msra.mxu0 %v1313_v37 }
 0x35a   :  { %v573_v45 = vsel %vm430_vm7, %v563_v36, %v572_v43  ;;  %v983_v36 = vld [vmem:[#allocation14 + $0x10] sm:$0xff]  ;;  %1315 = vmatprep.subr.bf16.mxu0 %v1630_v0 }
 0x35b   :  { %v535_v39 = vpop.permute.xlu1 %534 }
 0x35c   :  { %v567_v44 = vrot.slane %v535_v39, %v1863_v15  ;;  %v1316_v39 = vpack.c.bf16 %v984_v38, %v983_v36 }
 0x35e   :  { %v574_v46 = vsel %vm432_vm8, %v567_v44, %v573_v45  ;;  %1317 = vmatpush3.bf16.msra.mxu0 %v1316_v39 }
 0x35f   :  { %v576_v48 = vsel %vm435_vm9, %v574_v46, 0.0 }
 0x360   :  { %577 = vadd.xlane.f32.xlu1 %v576_v48  ;;  %v824_v48 = vld [vmem:[#allocation13] sm:$0xff] }
 0x361   :  { %1284 = vmatmul.mubr.msk.f32.vlgmr.msra.gmra.mrb[2].mxu0 %vm159_vm1, %v1836_v8 }
 0x3ed   :  { %v578_v49 = vpop.xlane.xlu1 %577 }
 0x3ee   :  { %1378 = vrcp.f32 %v578_v49  ;;  %v825_v49 = vld [vmem:[#allocation13 + $0x8] sm:$0xff] }
 0x3f8   :  { %v1379_v50 = vpop.eup %1378 }
 0x3f9   :  { %v584_v51 = vrot.slane %v1379_v50, %v1848_v19  ;;  %v588_v53 = vrot.slane %v1379_v50, %v1882_v40  ;;  %v592_v56 = vrot.slane %v1379_v50, %v1885_v41  ;;  %v596_v59 = vrot.slane %v1379_v50, %v1888_v42 }
 0x3fa   :  { %v600_v61 = vrot.slane %v1379_v50, %v1894_v47  ;;  %v604_v2 = vrot.slane %v1379_v50, %v1898_v54  ;;  %v612_v6 = vrot.slane %v1379_v50, %v1906_v62 }
 0x3fb   :  { %v621_v52 = vmul.f32 %v1363_v4, %v584_v51  ;;  %v622_v55 = vmul.f32 %v1365_v5, %v588_v53  ;;  %v623_v57 = vmul.f32 %v1367_v10, %v592_v56  ;;  %v624_v60 = vmul.f32 %v1369_v14, %v596_v59  ;;  %v821_v53 = vld [vmem:[#allocation11 + $0x8] sm:$0xff] }
 0x3fc   :  { %v625_v63 = vmul.f32 %v1371_v17, %v600_v61  ;;  %v626_v3 = vmul.f32 %v1373_v18, %v604_v2  ;;  %v608_v4 = vrot.slane %v1379_v50, %v1902_v58  ;;  %v628_v7 = vmul.f32 %v1377_v21, %v612_v6 }
 0x3fd   :  { %638 = vperm.xlu0 %1345, %v621_v52   ;;  %v1304_v50 = vpack.c.bf16 %v825_v49, %v824_v48  ;;  %v154_v52 = vld [vmem:[#allocation5] sm:$0xff] }
 0x3fe   :  { %v627_v5 = vmul.f32 %v1375_v20, %v608_v4  ;;  %v790_v4 = vld [vmem:[#allocation8 + $0x8] sm:$0xff] }
 0x3ff   :  { %1305 = vmatpush3.bf16.msra.mxu1 %v1304_v50 }
 0x400   :  { %1306 = vmatprep.subr.bf16.mxu1 %v1630_v0 }
 0x401   :  { %641 = vperm.xlu0 %1345, %v622_v55   ;;  %v823_v55 = vld [vmem:[#allocation11 + $0x18] sm:$0xff] }
 0x402   :  { %1262 = vmatmul.mubr.msk.f32.vlgmr.msra.gmra.mrb[0].mxu1 %vm826_vm10, %v154_v52 }
 0x403   :  { %1272 = vmatprep.mubr.msk.f32.mxu1 %vm1631_vm0, %v1632_v1 }
 0x405   :  { %644 = vperm.xlu0 %1345, %v623_v57  }
 0x409   :  { %647 = vperm.xlu0 %1345, %v624_v60  }
 0x40d   :  { %650 = vperm.xlu0 %1345, %v625_v63  }
 0x411   :  { %653 = vperm.xlu0 %1345, %v626_v3  }
 0x415   :  { %656 = vperm.xlu0 %1345, %v627_v5   ;;  %v791_v5 = vld [vmem:[#allocation8 + $0x10] sm:$0xff] }
 0x419   :  { %659 = vperm.xlu0 %1345, %v628_v7  }
 0x434   :  { %v1058_v61 = vpop.f32.mrb[2].mxu0 }
 0x435   :  { %v1285_v3 = vpop.f32.mrb[3].mxu0 }
 0x47c   :  { %v639_v9 = vpop.permute.xlu0 %638 }
 0x47d   :  { %v664_v18 = vrot.slane %v639_v9, %v1863_v15 }
 0x480   :  { %v642_v10 = vpop.permute.xlu0 %641 }
 0x481   :  { %v668_v17 = vrot.slane %v642_v10, %v1863_v15 }
 0x483   :  { %v693_v21 = vsel %vm420_vm2, %v668_v17, %v664_v18  ;;  %v794_v17 = vld [vmem:[#allocation8 + $0x28] sm:$0xff] }
 0x484   :  { %v645_v12 = vpop.permute.xlu0 %644 }
 0x485   :  { %v672_v22 = vrot.slane %v645_v12, %v1863_v15  ;;  %v793_v12 = vld [vmem:[#allocation8 + $0x20] sm:$0xff] }
 0x487   :  { %v694_v25 = vsel %vm422_vm3, %v672_v22, %v693_v21 }
 0x488   :  { %v648_v13 = vpop.permute.xlu0 %647 }
 0x489   :  { %v676_v23 = vrot.slane %v648_v13, %v1863_v15 }
 0x48b   :  { %v695_v27 = vsel %vm424_vm4, %v676_v23, %v694_v25 }
 0x48c   :  { %v651_v14 = vpop.permute.xlu0 %650 }
 0x48d   :  { %v680_v20 = vrot.slane %v651_v14, %v1863_v15 }
 0x48f   :  { %v696_v28 = vsel %vm426_vm5, %v680_v20, %v695_v27 }
 0x490   :  { %v654_v16 = vpop.permute.xlu0 %653 }
 0x491   :  { %v684_v24 = vrot.slane %v654_v16, %v1863_v15 }
 0x493   :  { %v697_v30 = vsel %vm428_vm6, %v684_v24, %v696_v28 }
 0x494   :  { %v657_v11 = vpop.permute.xlu0 %656 }
 0x495   :  { %v688_v26 = vrot.slane %v657_v11, %v1863_v15 }
 0x497   :  { %v698_v32 = vsel %vm430_vm7, %v688_v26, %v697_v30  ;;  %v795_v26 = vld [vmem:[#allocation8 + $0x30] sm:$0xff] }
 0x498   :  { %v660_v29 = vpop.permute.xlu0 %659 }
 0x499   :  { %v692_v31 = vrot.slane %v660_v29, %v1863_v15 }
 0x49b   :  { %v699_v33 = vsel %vm432_vm8, %v692_v31, %v698_v32 }
 0x49c   :  { %701 = vxpose.xlu1.b32.start.end [1/1] (short) (narrow) %v699_v33, 8  ;;  %v796_v33 = vld [vmem:[#allocation8 + $0x38] sm:$0xff] }
 0x51c   :  { %v717_v43 = vpop.trf.xlu1 }
 0x51d   :  { %v736_v15 = vrot.slane %v717_v43, %v1848_v19  ;;  %v743_v44 = vrot.slane %v717_v43, %v1882_v40  ;;  %v750_v45 = vrot.slane %v717_v43, %v1885_v41  ;;  %v757_v46 = vrot.slane %v717_v43, %v1888_v42  ;;  %v820_v19 = vld [vmem:[#allocation11] sm:$0xff]  ;;  %v822_v42 = vld [vmem:[#allocation11 + $0x10] sm:$0xff] }
 0x51e   :  { %v764_v51 = vrot.slane %v717_v43, %v1894_v47  ;;  %v1307_v40 = vpack.c.bf16 %v821_v53, %v820_v19  ;;  %v771_v41 = vrot.slane %v717_v43, %v1898_v54  ;;  %v1310_v47 = vpack.c.bf16 %v823_v55, %v822_v42  ;;  %v1218_v54 = vld [vmem:[%s2037_s10] ss:$0 sm:$0xff] }
 0x51f   :  { %738 = vbcast.lane.b32.xlu0 %v736_v15, 256  ;;  %v778_v56 = vrot.slane %v717_v43, %v1902_v58  ;;  %v785_v57 = vrot.slane %v717_v43, %v1906_v62  ;;  %v1059_v2 = vadd.f32 %v1218_v54, %v1058_v61  ;;  %v789_v58 = vld [vmem:[#allocation8] sm:$0xff]  ;;  %v792_v62 = vld [vmem:[#allocation8 + $0x18] sm:$0xff]  ;;  %v896_v15 = vpop.f32.mrb[0].mxu1 }
 0x520   :  { %1308 = vmatpush3.bf16.msra.mxu1 %v1307_v40 }
 0x521   :  { %1309 = vmatprep.subr.bf16.mxu1 %v1630_v0 }
 0x523   :  { %745 = vbcast.lane.b32.xlu0 %v743_v44, 256  ;;  %v1263_v44 = vpop.f32.mrb[1].mxu1 }
 0x524   :  { %1311 = vmatpush3.bf16.msra.mxu1 %v1310_v47  ;;  %v1091_v47 = vld [vmem:[%s2038_s11] sm:$0xff] }
 0x525   :  { %1318 = vmatprep.subr.bf16.mxu1 %v1630_v0 }
 0x527   :  { %752 = vbcast.lane.b32.xlu0 %v750_v45, 256 }
 0x52b   :  { %759 = vbcast.lane.b32.xlu0 %v757_v46, 256  ;;  %v1217_v46 = vld [vmem:[%s2036_s9] ss:$0 sm:$0xff] }
 0x52f   :  { %766 = vbcast.lane.b32.xlu0 %v764_v51, 256 }
 0x533   :  { %773 = vbcast.lane.b32.xlu0 %v771_v41, 256 }
 0x537   :  { %780 = vbcast.lane.b32.xlu0 %v778_v56, 256  ;;  %v1092_v56 = vld [vmem:[%s2038_s11 + $0x8] sm:$0xff] }
 0x53b   :  { %787 = vbcast.lane.b32.xlu0 %v785_v57, 256  ;;  %v1093_v57 = vld [vmem:[%s2038_s11 + $0x10] sm:$0xff] }
 0x53f   :  { %1070 = vrot.lane.b32.xlu0 %v1059_v2, %s1635_s24 }
 0x591   :  { %v739_v59 = vpop.permute.xlu0 %738 }
 0x592   :  { %v797_v9 = vmul.f32 %v789_v58, %v739_v59  ;;  %v1319_v59 = vpack.c.bf16 %v1092_v56, %v1091_v47 }
 0x594   :  { %v805_v22 = vsel %vm159_vm1, %v797_v9, 0.0 }
 0x595   :  { %v746_v60 = vpop.permute.xlu0 %745 }
 0x596   :  { %v798_v7 = vmul.f32 %v790_v4, %v746_v60  ;;  %v1094_v60 = vld [vmem:[%s2038_s11 + $0x18] sm:$0xff]  ;;  %s1638_s11 = smov [#allocation16]  }
 0x597   :  { %v1322_v54 = vpack.c.bf16 %v1094_v60, %v1093_v57  ;;  %s1186_s18 = sshll.u32 %s1638_s11, 4  ;;  %s1187_s18 = int_to_ptr.vmem [resolvable:$true] %s1186_s18 }
 0x598   :  { %v806_v14 = vsel %vm159_vm1, %v798_v7, 0.0  ;;  %s1562_s3 = scalar_lea.vmem %s1187_s18, 128  ;;  %p1567_p9 = scmp.lt.s32.totalorder %s1187_s18, %s1187_s18 }
 0x599   :  { %v753_v63 = vpop.permute.xlu0 %752  ;;  %v807_v20 = vadd.f32 %v806_v14, %v805_v22  ;;  %p1563_p8 = scmp.ne.s32.totalorder %s1187_s18, %s1562_s3  ;;  %p1568_p10 = scmp.lt.s32.totalorder %s1562_s3, %s1562_s3 }
 0x59a   :  { %v799_v10 = vmul.f32 %v791_v5, %v753_v63 }
 0x59b   :  { %p1569_p11 = por %p1568_p10, %p1567_p9 }
 0x59c   :  { %v808_v18 = vsel %vm159_vm1, %v799_v10, 0.0 }
 0x59d   :  { %v760_v6 = vpop.permute.xlu0 %759  ;;  %v809_v25 = vadd.f32 %v808_v18, %v807_v20  ;;  %p1570_p12 = pnand %p1569_p11, %p1563_p8 }
 0x59e   :  { %v800_v16 = vmul.f32 %v792_v62, %v760_v6 }
 0x5a0   :  { %v810_v21 = vsel %vm159_vm1, %v800_v16, 0.0 }
 0x5a1   :  { %v767_v13 = vpop.permute.xlu0 %766  ;;  %v811_v28 = vadd.f32 %v810_v21, %v809_v25 }
 0x5a2   :  { %v801_v23 = vmul.f32 %v793_v12, %v767_v13 }
 0x5a4   :  { %v812_v27 = vsel %vm159_vm1, %v801_v23, 0.0 }
 0x5a5   :  { %v774_v11 = vpop.permute.xlu0 %773  ;;  %v813_v32 = vadd.f32 %v812_v27, %v811_v28 }
 0x5a6   :  { %v802_v24 = vmul.f32 %v794_v17, %v774_v11 }
 0x5a8   :  { %v814_v30 = vsel %vm159_vm1, %v802_v24, 0.0 }
 0x5a9   :  { %v781_v29 = vpop.permute.xlu0 %780  ;;  %v815_v35 = vadd.f32 %v814_v30, %v813_v32 }
 0x5aa   :  { %v803_v31 = vmul.f32 %v795_v26, %v781_v29 }
 0x5ac   :  { %v816_v34 = vsel %vm159_vm1, %v803_v31, 0.0 }
 0x5ad   :  { %v788_v36 = vpop.permute.xlu0 %787  ;;  %v817_v38 = vadd.f32 %v816_v34, %v815_v35 }
 0x5ae   :  { %v804_v37 = vmul.f32 %v796_v33, %v788_v36 }
 0x5b0   :  { %v818_v39 = vsel %vm159_vm1, %v804_v37, 0.0 }
 0x5b1   :  { %v819_v43 = vadd.f32 %v818_v39, %v817_v38  ;;  %v1071_v40 = vpop.permute.xlu0 %1070 }
 0x5b3   :  { %1273 = vmatmul.mubr.msk.f32.vlgmr.msra.gmra.mrb[2].mxu1 %vm159_vm1, %v819_v43 }
 0x5b4   :  { %1294 = vmatprep.mubr.msk.f32.mxu1 %vm1631_vm0, %v1632_v1  ;;  %1320 = vmatpush3.bf16.msra.mxu1 %v1319_v59 }
 0x5b5   :  { %1321 = vmatprep.subr.bf16.mxu1 %v1630_v0 }
 0x5b8   :  { %1323 = vmatpush3.bf16.msra.mxu1 %v1322_v54 }
 0x686   :  { %v969_v45 = vpop.f32.mrb[2].mxu1 }
 0x687   :  { %v970_v48 = vadd.f32 %v969_v45, %v896_v15  ;;  %v1274_v49 = vpop.f32.mrb[3].mxu1 }
 0x689   :  { %v980_v50 = vadd.f32 %v1217_v46, %v970_v48 }
 0x68b   :  { %v1062_v51 = vadd.f32 %v1059_v2, %v980_v50 }
 0x68d   :  { %v1220_v52 = vmul.f32 -1.442695, %v1062_v51 }
 0x68f   :  { %1380 = vpow2.f32 %v1220_v52 }
 0x699   :  { %v1381_v19 = vpop.eup %1380 }
 0x69a   :  { %v1066_v53 = vadd.f32 1.0, %v1381_v19 }
 0x69c   :  { %1382 = vrcp.f32 %v1066_v53 }
 0x6a6   :  { %v1383_v41 = vpop.eup %1382 }
 0x6a7   :  { %v1073_v42 = vmul.f32 %v1383_v41, %v1071_v40  ;;  %v1080_v2 = vsub.f32 1.0, %v1383_v41 }
 0x6a9   :  { %1075 = vrot.lane.b32.xlu0 %v1073_v42, %s1635_s24 }
 0x71b   :  { %v1076_v1 = vpop.permute.xlu0 %1075 }
 0x71c   :  { %v1078_v55 = vadd.f32 %v1076_v1, %v980_v50 }
 0x71e   :  { %1384 = vtanh.f32 %v1078_v55 }
 0x728   :  { %v1385_v61 = vpop.eup %1384 }
 0x729   :  { %1082 = vrot.lane.b32.xlu0 %v1385_v61, %s1636_s28 }
 0x72d   :  { %1086 = vrot.lane.b32.xlu0 %v1836_v8, %s1637_s17 }
 0x79b   :  { %v1083_v63 = vpop.permute.xlu0 %1082 }
 0x79c   :  { %v1085_v4 = vmul.f32 %v1083_v63, %v1080_v2 }
 0x79f   :  { %v1087_v3 = vpop.permute.xlu0 %1086 }
 0x7a0   :  { %v1089_v58 = vmul.f32 %v1383_v41, %v1087_v3 }
 0x7a2   :  { %v1090_v5 = vadd.f32 %v1089_v58, %v1085_v4 }
 0x7a4   :  { %1103 = vrot.lane.b32.xlu0 %v1090_v5, %s1636_s28 }
 0x816   :  { %v1104_v6 = vpop.permute.xlu0 %1103 }
 0x817   :  { %1178 = vst.msk [vmem:[#allocation16] sm:$0xff] %vm159_vm1, %v1104_v6  ;;  %1295 = vmatmul.mubr.msk.f32.vlgmr.msra.gmra.mrb[4].mxu1 %vm159_vm1, %v1104_v6 }
 0x818   :  { %1573 = shalt.err (!%p1570_p12)
}
 0x819   :  { %s1574_s2 = scalar_lea.hbm %s2040_s13, 128 }
 0x81a   :  { %p1575_p13 = scmp.ne.s32.totalorder %s2040_s13, %s1574_s2  ;;  %p1578_p0 = scmp.lt.u32.totalorder %s1574_s2, %s2040_s13 }
 0x81c   :  { %p1580_p1 = pnand %p1578_p0, %p1575_p13 }
 0x81e   :  { %1583 = shalt.err (!%p1580_p1)
}
 0x81f   :  { %1189 = dma.vmem_to_hbm [thread:$0]  %s1187_s18, 128, %s2040_s13, [#allocation4]   ;;  %v1221_v0 = vld [vmem:[%s2039_s12] ss:$0 sm:$0xff] }
 0x820   :  { %s1639_s21 = smov [#allocation17]  }
 0x821   :  { %s1196_s24 = sshll.u32 %s1639_s21, 4  ;;  %s1197_s24 = int_to_ptr.vmem [resolvable:$true] %s1196_s24 }
 0x822   :  { %s1584_s10 = scalar_lea.vmem %s1197_s24, 128  ;;  %p1589_p3 = scmp.lt.s32.totalorder %s1197_s24, %s1197_s24 }
 0x823   :  { %p1585_p2 = scmp.ne.s32.totalorder %s1197_s24, %s1584_s10  ;;  %p1590_p4 = scmp.lt.s32.totalorder %s1584_s10, %s1584_s10 }
 0x825   :  { %p1591_p5 = por %p1590_p4, %p1589_p3 }
 0x827   :  { %p1592_p6 = pnand %p1591_p5, %p1585_p2 }
 0x8ea   :  { %v1173_v8 = vpop.f32.mrb[4].mxu1 }
 0x8eb   :  { %v1174_v7 = vadd.f32 %v1221_v0, %v1173_v8  ;;  %v1296_v62 = vpop.f32.mrb[5].mxu1 }
 0x8ed   :  { %1179 = vst [vmem:[#allocation17] sm:$0xff] %v1174_v7 }
 0x8ee   :  { %1595 = shalt.err (!%p1592_p6)
}
 0x8ef   :  { %s1596_s0 = scalar_lea.hbm %s2041_s14, 128 }
 0x8f0   :  { %p1597_p7 = scmp.ne.s32.totalorder %s2041_s14, %s1596_s0  ;;  %p1600_p8 = scmp.lt.u32.totalorder %s1596_s0, %s2041_s14 }
 0x8f2   :  { %p1602_p9 = pnand %p1600_p8, %p1597_p7 }
 0x8f4   :  { %1605 = shalt.err (!%p1602_p9)
}
 0x8f5   :  { %1199 = dma.vmem_to_hbm [thread:$0]  %s1197_s24, 128, %s2041_s14, [#allocation18]  }
 0x8f6   :  { %1616 = dma.done.wait [#allocation4], 128  }
 0x8f7   :  { %1617 = vsyncadd [#allocation4], 4294967168 }
 0x8f8   :  { %1618 = dma.done.wait [#allocation18], 128  }
 0x8f9   :  { %1619 = vsyncadd [#allocation18], 4294967168 }
 0x8fa   :  { %1206 = vsyncpa [#allocation3], 1 }
 0x8fb   :  { %1207 = vsyncpa [#allocation6], 1 }
 0x8fc   :  { %1208 = vsyncpa [#allocation9], 1 }
 0x8fd   :  { %1209 = vsyncpa [#allocation12], 1 }
 0x8fe   :  { %1210 = vsyncpa [#allocation15], 1 }
 0x8ff   :  { %1211 = vsyncpa [#allocation4], 1 }
 0x900   :  { %1212 = vsyncpa [#allocation18], 1 }

</bundles_post_ra>
